<compile_context>
chip_gen: v6e
topology: v6e:2x2x1
jax: 0.10.0
libtpu: 0.0.40
codegen_flags: <defaults>
</compile_context>

<pallas_src>
import functools

import jax
import jax.numpy as jnp
from jax.experimental import pallas as pl
from jax.experimental.pallas import tpu as pltpu

LANE = 128


def _conv_gelu_kernel(x_ref, w_ref, b_ref, o_ref, *, K, stride):
    """One (batch, row-band) tile per grid step.

    x_ref: (1, TH_in, Wp, Cin)   bf16 padded input band (incl. (K-1)-row halo)
    w_ref: (K*K*Cin, Cout_p)     bf16 im2col-ordered weights, Cout padded to 128
    b_ref: (1, Cout_p)           f32 bias (zero-padded)
    o_ref: (1, TH, Wo, Cout_p)   output band (lane-dense, Cout_p multiple of 128)
    """
    TH, Wo, Cout_p = o_ref.shape[1], o_ref.shape[2], o_ref.shape[3]
    x = x_ref[0]                                           # (TH_in, Wp, Cin)

    # Stage the im2col tile once: taps in (kh, kw) row-major order, Cin minor,
    # matching the wrapper-side weight reshape.  Single big contraction below
    # replaces the previous 9 tiny per-tap matmuls.
    # TODO(synk): for stride > 1 a wrapper-side space-to-depth would avoid
    # sublane-strided reads; the default BasicConv test uses stride=1.
    cols = []
    for kh in range(K):
        for kw in range(K):
            cols.append(x[kh:kh + (TH - 1) * stride + 1:stride,
                          kw:kw + (Wo - 1) * stride + 1:stride, :])
    im2col = jnp.concatenate(cols, axis=-1).reshape(TH * Wo, -1)  # (TH*Wo, K*K*Cin)

    # Single MXU matmul, f32 accumulation.
    acc = jnp.dot(im2col, w_ref[...], preferred_element_type=jnp.float32)
    acc = acc + b_ref[0, :][None, :]

    # Exact GELU (erf-based), matching torch.nn.GELU() default.
    # TODO(synk): on v5e consider tanh-approx GELU (EUP) if VALU becomes binding.
    inv_sqrt2 = jnp.float32(0.7071067811865476)
    y = acc * 0.5 * (1.0 + jax.lax.erf(acc * inv_sqrt2))

    o_ref[...] = y.reshape(1, TH, Wo, Cout_p).astype(o_ref.dtype)


def basic_conv_forward(x_nchw, weight, bias, *, stride=1, th=8,
                       compute_dtype=jnp.bfloat16):
    """BasicConv forward: Conv2d(pad=k//2, stride) + bias + exact GELU.

    x_nchw : (N, Cin, H, W)    -- PyTorch NCHW layout
    weight : (Cout, Cin, K, K) -- PyTorch Conv2d weight layout
    bias   : (Cout,)
    returns (N, Cout, Ho, Wo) in NCHW.
    """
    N, Cin, H, W = x_nchw.shape
    Cout, _, K, _ = weight.shape
    pad = K // 2
    Ho = (H + 2 * pad - K) // stride + 1
    Wo = (W + 2 * pad - K) // stride + 1

    Cout_p = -(-Cout // LANE) * LANE            # lane-dense output channels

    TH = min(th, Ho)                            # output rows per band
    n_bands = -(-Ho // TH)
    Ho_pad = n_bands * TH
    TH_in = (TH - 1) * stride + K               # input rows per band (with halo)

    # ---- layout plumbing (XLA side) ----
    x_nhwc = jnp.transpose(x_nchw, (0, 2, 3, 1)).astype(compute_dtype)
    xp = jnp.pad(x_nhwc, ((0, 0), (pad, pad), (pad, pad), (0, 0)))
    Hp, Wp = xp.shape[1], xp.shape[2]
    Hp_need = (Ho_pad - 1) * stride + K
    if Hp_need > Hp:                            # extra rows for band padding
        xp = jnp.pad(xp, ((0, 0), (0, Hp_need - Hp), (0, 0), (0, 0)))

    # Materialise the overlapping row bands so BlockSpec blocks never overlap
    # ((K-1)*stride halo rows are duplicated — a few rows per band).
    bands = jnp.stack(
        [xp[:, j * TH * stride:j * TH * stride + TH_in, :, :]
         for j in range(n_bands)], axis=1)      # (N, n_bands, TH_in, Wp, Cin)
    bands = bands.reshape(N * n_bands, TH_in, Wp, Cin)

    # Weights in im2col order (kh, kw, cin) x cout, Cout zero-padded to 128.
    w_flat = jnp.transpose(weight, (2, 3, 1, 0)).reshape(K * K * Cin, Cout)
    w_flat = jnp.pad(w_flat, ((0, 0), (0, Cout_p - Cout))).astype(compute_dtype)
    b_flat = jnp.pad(bias.astype(jnp.float32), (0, Cout_p - Cout)).reshape(1, Cout_p)

    kernel = functools.partial(_conv_gelu_kernel, K=K, stride=stride)

    out = pl.pallas_call(
        kernel,
        out_shape=jax.ShapeDtypeStruct((N * n_bands, TH, Wo, Cout_p), x_nchw.dtype),
        grid_spec=pltpu.PrefetchScalarGridSpec(
            num_scalar_prefetch=0,
            grid=(N * n_bands,),
            in_specs=[
                pl.BlockSpec((1, TH_in, Wp, Cin), lambda m: (m, 0, 0, 0)),
                # NOTE: constant index_map still allocates 2 weight buffers;
                # negligible at (K*K*Cin, 128) bf16.
                pl.BlockSpec((K * K * Cin, Cout_p), lambda m: (0, 0)),
                pl.BlockSpec((1, Cout_p), lambda m: (0, 0)),
            ],
            out_specs=pl.BlockSpec((1, TH, Wo, Cout_p), lambda m: (m, 0, 0, 0)),
        ),
        compiler_params=pltpu.CompilerParams(
            dimension_semantics=("parallel",),
            vmem_limit_bytes=48 * 1024 * 1024,
        ),
    )(bands, w_flat, b_flat)

    out = out.reshape(N, Ho_pad, Wo, Cout_p)[:, :Ho, :, :Cout]
    return jnp.transpose(out, (0, 3, 1, 2))     # back to NCHW


def _reference_forward(x_nchw, weight, bias, *, stride=1):
    """Pure-JAX reference (lax conv + exact GELU) for verification."""
    K = weight.shape[-1]
    pad = K // 2
    y = jax.lax.conv_general_dilated(
        x_nchw, weight,
        window_strides=(stride, stride),
        padding=((pad, pad), (pad, pad)),
        dimension_numbers=("NCHW", "OIHW", "NCHW"),
    )
    y = y + bias.reshape(1, -1, 1, 1)
    return jax.nn.gelu(y, approximate=False)


if __name__ == "__main__":
    # Shapes consistent with BasicConv(in_channel=4, out_channel=8,
    # kernel_size=3, stride=1, bias=True, norm=False, relu=True, transpose=False)
    N, Cin, H, W = 2, 4, 16, 16
    Cout, K, stride = 8, 3, 1

    key = jax.random.PRNGKey(0)
    kx, kw, kb = jax.random.split(key, 3)

    x = jax.random.normal(kx, (N, Cin, H, W), dtype=jnp.float32)
    fan_in = Cin * K * K
    bound = 1.0 / (fan_in ** 0.5)
    weight = jax.random.uniform(kw, (Cout, Cin, K, K), jnp.float32, -bound, bound)
    bias = jax.random.uniform(kb, (Cout,), jnp.float32, -bound, bound)

    out = basic_conv_forward(x, weight, bias, stride=stride)
    out = jax.block_until_ready(out)
    assert out.shape == (N, Cout, H, W), out.shape

    # Tight check against a reference doing the same bf16-in / f32-accum math.
    ref_bf16 = _reference_forward(
        x.astype(jnp.bfloat16).astype(jnp.float32),
        weight.astype(jnp.bfloat16).astype(jnp.float32),
        bias, stride=stride)
    ref_bf16 = jax.block_until_ready(ref_bf16)
    assert jnp.allclose(out, ref_bf16, atol=1e-3, rtol=1e-3), float(
        jnp.max(jnp.abs(out - ref_bf16)))

    # Loose check against the exact f32 PyTorch-equivalent reference
    # (bf16 input/weight rounding is the only source of deviation).
    ref_f32 = _reference_forward(x, weight, bias, stride=stride)
    ref_f32 = jax.block_until_ready(ref_f32)
    assert jnp.allclose(out, ref_f32, atol=5e-2, rtol=5e-2), float(
        jnp.max(jnp.abs(out - ref_f32)))

    print("KERNEL_OK")
</pallas_src>

<mosaic_0001>
module attributes {stable_mosaic.version = 11 : i64} {
  func.func @_conv_gelu_kernel(%arg0: i32, %arg1: memref<1x10x18x4xbf16, #tpu.memory_space<vmem>>, %arg2: memref<36x128xbf16, #tpu.memory_space<vmem>>, %arg3: memref<1x128xf32, #tpu.memory_space<vmem>>, %arg4: memref<1x8x16x128xf32, #tpu.memory_space<vmem>>) attributes {dimension_semantics = [#tpu.dimension_semantics<parallel>], iteration_bounds = array<i64: 4>, scalar_prefetch = 0 : i64, scratch_operands = 0 : i64, tpu.core_type = #tpu.core_type<tc>, window_params = [{transform_indices = @transform_0, window_bounds = array<i64: 1, 10, 18, 4>}, {pipeline_mode = #tpu.pipeline_mode<synchronous>, transform_indices = @transform_1, window_bounds = array<i64: 36, 128>}, {pipeline_mode = #tpu.pipeline_mode<synchronous>, transform_indices = @transform_2, window_bounds = array<i64: 1, 128>}, {transform_indices = @transform_3, window_bounds = array<i64: 1, 8, 16, 128>}]} {
    %c0 = arith.constant 0 : index
    %c0_0 = arith.constant 0 : index
    %c0_1 = arith.constant 0 : index
    %c0_2 = arith.constant 0 : index
    %0 = vector.load %arg1[%c0, %c0_0, %c0_1, %c0_2] : memref<1x10x18x4xbf16, #tpu.memory_space<vmem>>, vector<1x10x18x4xbf16>
    %1 = vector.shape_cast %0 : vector<1x10x18x4xbf16> to vector<10x18x4xbf16>
    %2 = vector.extract_strided_slice %1 {offsets = [0, 0, 0], sizes = [8, 16, 4], strides = [1, 1, 1]} : vector<10x18x4xbf16> to vector<8x16x4xbf16>
    %3 = vector.extract_strided_slice %1 {offsets = [0, 1, 0], sizes = [8, 16, 4], strides = [1, 1, 1]} : vector<10x18x4xbf16> to vector<8x16x4xbf16>
    %4 = vector.extract_strided_slice %1 {offsets = [0, 2, 0], sizes = [8, 16, 4], strides = [1, 1, 1]} : vector<10x18x4xbf16> to vector<8x16x4xbf16>
    %5 = vector.extract_strided_slice %1 {offsets = [1, 0, 0], sizes = [8, 16, 4], strides = [1, 1, 1]} : vector<10x18x4xbf16> to vector<8x16x4xbf16>
    %6 = vector.extract_strided_slice %1 {offsets = [1, 1, 0], sizes = [8, 16, 4], strides = [1, 1, 1]} : vector<10x18x4xbf16> to vector<8x16x4xbf16>
    %7 = vector.extract_strided_slice %1 {offsets = [1, 2, 0], sizes = [8, 16, 4], strides = [1, 1, 1]} : vector<10x18x4xbf16> to vector<8x16x4xbf16>
    %8 = vector.extract_strided_slice %1 {offsets = [2, 0, 0], sizes = [8, 16, 4], strides = [1, 1, 1]} : vector<10x18x4xbf16> to vector<8x16x4xbf16>
    %9 = vector.extract_strided_slice %1 {offsets = [2, 1, 0], sizes = [8, 16, 4], strides = [1, 1, 1]} : vector<10x18x4xbf16> to vector<8x16x4xbf16>
    %10 = vector.extract_strided_slice %1 {offsets = [2, 2, 0], sizes = [8, 16, 4], strides = [1, 1, 1]} : vector<10x18x4xbf16> to vector<8x16x4xbf16>
    %11 = tpu.concatenate %2, %3, %4, %5, %6, %7, %8, %9, %10 in 2 : vector<8x16x4xbf16>, vector<8x16x4xbf16>, vector<8x16x4xbf16>, vector<8x16x4xbf16>, vector<8x16x4xbf16>, vector<8x16x4xbf16>, vector<8x16x4xbf16>, vector<8x16x4xbf16>, vector<8x16x4xbf16> -> vector<8x16x36xbf16>
    %12 = vector.shape_cast %11 : vector<8x16x36xbf16> to vector<128x36xbf16>
    %c0_3 = arith.constant 0 : index
    %c0_4 = arith.constant 0 : index
    %13 = vector.load %arg2[%c0_3, %c0_4] : memref<36x128xbf16, #tpu.memory_space<vmem>>, vector<36x128xbf16>
    %cst = arith.constant dense<0.000000e+00> : vector<128x128xf32>
    %14 = tpu.matmul %12, %13, %cst {dimension_numbers = #tpu.dot_dimension_numbers<[1], [0], [0], [1], [0, 0, 1, 1], [], []>} : vector<128x36xbf16>, vector<36x128xbf16>, vector<128x128xf32> -> vector<128x128xf32>
    %c0_5 = arith.constant 0 : index
    %c0_6 = arith.constant 0 : index
    %15 = vector.load %arg3[%c0_5, %c0_6] : memref<1x128xf32, #tpu.memory_space<vmem>>, vector<1x128xf32>
    %16 = vector.shape_cast %15 : vector<1x128xf32> to vector<128xf32>
    %17 = vector.shape_cast %16 : vector<128xf32> to vector<1x128xf32>
    %18 = vector.broadcast %17 : vector<1x128xf32> to vector<128x128xf32>
    %19 = arith.addf %14, %18 : vector<128x128xf32>
    %cst_7 = arith.constant 5.000000e-01 : f32
    %20 = vector.broadcast %cst_7 : f32 to vector<128x128xf32>
    %21 = arith.mulf %19, %20 : vector<128x128xf32>
    %cst_8 = arith.constant 0.707106769 : f32
    %22 = vector.broadcast %cst_8 : f32 to vector<128x128xf32>
    %23 = arith.mulf %19, %22 : vector<128x128xf32>
    %24 = math.erf %23 : vector<128x128xf32>
    %cst_9 = arith.constant 1.000000e+00 : f32
    %25 = vector.broadcast %cst_9 : f32 to vector<128x128xf32>
    %26 = arith.addf %25, %24 : vector<128x128xf32>
    %27 = arith.mulf %21, %26 : vector<128x128xf32>
    %28 = vector.shape_cast %27 : vector<128x128xf32> to vector<1x8x16x128xf32>
    %c0_10 = arith.constant 0 : index
    %c0_11 = arith.constant 0 : index
    %c0_12 = arith.constant 0 : index
    %c0_13 = arith.constant 0 : index
    %29 = vector.load %arg4[%c0_10, %c0_11, %c0_12, %c0_13] : memref<1x8x16x128xf32, #tpu.memory_space<vmem>>, vector<1x8x16x128xf32>
    tpu.vector_store %arg4[%c0_10, %c0_11, %c0_12, %c0_13], %28 {strides = array<i32>} : memref<1x8x16x128xf32, #tpu.memory_space<vmem>>, vector<1x8x16x128xf32>,
    return
  }
  func.func @transform_0(%arg0: i32) -> (i32, i32, i32, i32) {
    %c0_i32 = arith.constant 0 : i32
    %c0_i32_0 = arith.constant 0 : i32
    %c0_i32_1 = arith.constant 0 : i32
    %c0_i32_2 = arith.constant 0 : i32
    return %arg0, %c0_i32, %c0_i32_0, %c0_i32_1 : i32, i32, i32, i32
  }
  func.func @transform_1(%arg0: i32) -> (i32, i32) {
    %c0_i32 = arith.constant 0 : i32
    %c0_i32_0 = arith.constant 0 : i32
    %c0_i32_1 = arith.constant 0 : i32
    return %c0_i32, %c0_i32_0 : i32, i32
  }
  func.func @transform_2(%arg0: i32) -> (i32, i32) {
    %c0_i32 = arith.constant 0 : i32
    %c0_i32_0 = arith.constant 0 : i32
    %c0_i32_1 = arith.constant 0 : i32
    return %c0_i32, %c0_i32_0 : i32, i32
  }
  func.func @transform_3(%arg0: i32) -> (i32, i32, i32, i32) {
    %c0_i32 = arith.constant 0 : i32
    %c0_i32_0 = arith.constant 0 : i32
    %c0_i32_1 = arith.constant 0 : i32
    %c0_i32_2 = arith.constant 0 : i32
    return %arg0, %c0_i32, %c0_i32_0, %c0_i32_1 : i32, i32, i32, i32
  }
}

</mosaic_0001>

<bundles_post_ra>
// kernel: tpu_custom_call.1
= control target key start
LH: loop header
LB: loop body
LE: loop exit
PB: predicated region body
PF: predicated region fallthrough
CT: control target
= control target key end

     0   :  { %8 = vsyncpa [#allocation3], 0  ;;  %s1755_s0 = inlined_call_operand.vmem [shape: bf16[4,10,18,4], index: 0, kind: input, shape index: {}]   ;;  %s1756_s1 = inlined_call_operand.vmem [shape: bf16[36,128], index: 1, kind: input, shape index: {}]   ;;  %s1757_s2 = inlined_call_operand.vmem [shape: f32[1,128], index: 2, kind: input, shape index: {}]   ;;  %s1758_s3 = inlined_call_operand.hbm [shape: f32[4,8,16,128], index: 3, kind: output, shape index: {}]  }
   0x1   :  { %10 = vsyncpa [#allocation3 + $0x1], 0  ;;  %s1294_s12 = smov 0   ;;  %s1296_s13 = smov 0  }
   0x2   :  { %s1298_s14 = smov 0   ;;  %s1300_s15 = smov 0  }
   0x3 LB: > { %s1315_s16 = sadd.s32 4294967295, %s1262_s15   ;;  %s1013_s17 = sadd.s32 4294967294, %s1262_s15   ;;  %s1262_s15 = sphi %s1300_s15, %s1764_s15   ;;  %s1258_s14 = sphi %s1298_s14, %s1763_s14   ;;  %s1254_s13 = sphi %s1296_s13, %s1762_s13   ;;  %s1250_s12 = sphi %s1294_s12, %s1761_s12  }
   0x4   : > { %s1319_s18 = sadd.s32 1, %s1262_s15   ;;  %s91_s19 = sadd.s32 1, %s1258_s14 }
   0x5   : > { %s88_s20 = ssub.s32 %s1262_s15, %s1319_s18  ;;  %p101_p0 = scmp.ne.s32.totalorder %s1258_s14, %s1254_s13 }
   0x6   : > { %p89_p1 = scmp.eq.s32.totalorder %s88_s20, 0  ;;  %p102_p2 = scmp.eq.s32.totalorder %s1315_s16, 3 }
   0x7   : > { %p107_p3 = scmp.ne.s32.totalorder %s1254_s13, %s1250_s12  ;;  %p108_p4 = scmp.eq.s32.totalorder %s1013_s17, 3 }
   0x8   : > { %s1330_s21 = scalar_select %p89_p1, %s1258_s14, %s91_s19  }
   0x9   : > { %p1332_p5 = por %p102_p2, %p101_p0  ;;  %p1336_p6 = por %p108_p4, %p107_p3 }
   0xa   : > { %p1016_p7 = scmp.ge.s32.totalorder %s1262_s15, 1  ;;  %p140_p8 = scmp.lt.s32.totalorder %s1262_s15, 5 }
   0xc   : > { %p141_p9 = pnand %p1016_p7, %p140_p8 }
   0xd   : > { %p164_p10 = scmp.lt.s32.totalorder (!%p141_p9), %s1315_s16, 3  ;;  %s1264_s29 = smov (!%p141_p9), 12  }
   0xe   : > { %144 = sbr.rel (%p141_p9) target bundleno = 501 (0x1f5), region = 32  ;;  %s1265_s30 = smov (!%p141_p9), 8  }
   0xf   : > { %s1266_s4 = smov (!%p141_p9), 4   ;;  %s1267_s5 = smov (!%p141_p9), 16  }
  0x10   : > { %s1268_s6 = smov (!%p141_p9), 20   ;;  %s1269_s7 = smov (!%p141_p9), 24  }
  0x11   : > { %s1270_s17 = smov (!%p141_p9), 28   ;;  %s161_s27 = sand.u32 (!%p141_p9), 1, %s1254_s13  }
  0x12   : > { %s1714_s8 = scalar_lea.sflag (!%p141_p9), [#allocation3], %s161_s27  ;;  %s1272_s10 = smov (!%p141_p9), [#allocation2]  }
  0x13   : > { %s165_s24 = scalar_select %p164_p10, %s1315_s16, 3  ;;  %vm377_vm0 = vcmask 1046528   ;;  %vm264_vm1 = vsmask.f32 7424  ;;  %vm740_vm2 = vcmask 1041408   ;;  %vm560_vm3 = vcmask 31744  }
  0x14   : > { %vm577_vm4 = vcmask 64512   ;;  %vm611_vm5 = vcmask 130048   ;;  %vm594_vm6 = vcmask 97280   ;;  %vm628_vm7 = vcmask 162816   ;;  %s1206_s11 = sshll.u32 %s1272_s10, 4  ;;  %s1207_s11 = int_to_ptr.vmem [resolvable:$false] %s1206_s11 }
  0x15   : > { %s1098_s25 = smul.u32 120, %s165_s24  ;;  %s1271_s24 = smov 32   ;;  %vm645_vm8 = vcmask 195584   ;;  %vm662_vm9 = vcmask 228352   ;;  %vm679_vm10 = vcmask 261120   ;;  %vm723_vm11 = vcmask 293888  }
  0x17   : > { %s1347_s28 = scalar_lea.vmem %s1755_s0, %s1098_s25 }
  0x18   : > { %v1350_v0 = vld [vmem:[%s1347_s28 + $0x3c] sm:$0xff]   ;;  %v1353_v1 = vld [vmem:[%s1347_s28 + $0xc] sm:$0xff]   ;;  %v1150_v3 = vld [vmem:[%s1347_s28 + $0x38] ss:$0 sps:$4 sm:$0x11]  }
  0x19   : > { %431 = vrot.lane.b32.xlu1 %v1350_v0, %s1264_s29  ;;  %423 = vrot.lane.b32.xlu0 %v1353_v1, %s1264_s29  ;;  %v1360_v2 = vld [vmem:[%s1347_s28 + $0x30] sm:$0xff]   ;;  %v1364_v4 = vld [vmem:[%s1347_s28] sm:$0xff]   ;;  %v393_v5 = vrot.slane %v1350_v0, 1  ;;  %v391_v7 = vrot.slane %v1150_v3, 1  ;;  %v381_v9 = vrot.slane %v1353_v1, 1  ;;  %v278_v16 = vshrl.u32 %v1353_v1, 16 }
  0x1a   : > { %v390_v6 = vrot.slane %v1360_v2, 1  ;;  %v1152_v8 = vld [vmem:[%s1347_s28 + $0x8] ss:$0 sps:$4 sm:$0x11]   ;;  %v378_v10 = vrot.slane %v1364_v4, 1  ;;  %v280_v17 = vshll.u32 %v1353_v1, 16 }
  0x1b   : > { %v1153_v11 = vld [vmem:[%s1347_s28 + $0x44] ss:$0 sps:$4 sm:$0x11]   ;;  %v379_v13 = vrot.slane %v1152_v8, 1  ;;  %v266_v18 = vshrl.u32 %v1364_v4, 16  ;;  %v268_v22 = vshll.u32 %v1364_v4, 16 }
  0x1c   : > { %v1373_v12 = vsel %vm377_vm0, %v390_v6, %v391_v7  ;;  %v1154_v14 = vld [vmem:[%s1347_s28 + $0x14] ss:$0 sps:$4 sm:$0x11]   ;;  %v394_v15 = vrot.slane %v1153_v11, 1  ;;  %v282_v24 = vrot.slane %v280_v17, 1  ;;  %v273_v25 = vshll.u32 %v1152_v8, 16 }
  0x1d   : > { %410 = vrot.lane.b32.xlu1 %v1373_v12, %s1265_s30  ;;  %v380_v19 = vsel %vm377_vm0, %v378_v10, %v379_v13  ;;  %v382_v20 = vrot.slane %v1154_v14, 1  ;;  %v285_v21 = vshll.u32 %v1154_v14, 16  ;;  %v326_v26 = vshrl.u32 %v1350_v0, 16  ;;  %v1397_v39 = vld [vmem:[%s1347_s28 + $0x48] sm:$0xff]   ;;  %v1404_v46 = vld [vmem:[%s1347_s28 + $0x18] sm:$0xff]   ;;  %v1422_v57 = vld [vmem:[%s1347_s28 + $0x60] sm:$0xff]  }
  0x1e   : > { %402 = vrot.lane.b32.xlu0 %v380_v19, %s1265_s30  ;;  %v1385_v23 = vsel %vm377_vm0, %v393_v5, %v394_v15  ;;  %v270_v29 = vrot.slane %v268_v22, 1  ;;  %v328_v30 = vshll.u32 %v1350_v0, 16  ;;  %v283_v31 = vor.u32 %v282_v24, %v278_v16  ;;  %v1157_v47 = vld [vmem:[%s1347_s28 + $0x50] ss:$0 sps:$4 sm:$0x11]  }
  0x1f   : > { %v1389_v27 = vsel %vm377_vm0, %v381_v9, %v382_v20  ;;  %v287_v28 = vrot.slane %v285_v21, 1  ;;  %v275_v32 = vrot.slane %v273_v25, 1  ;;  %v333_v33 = vshll.u32 %v1153_v11, 16  ;;  %v1158_v51 = vld [vmem:[%s1347_s28 + $0x20] ss:$0 sps:$4 sm:$0x11]  }
  0x20   : > { %v314_v34 = vshrl.u32 %v1360_v2, 16  ;;  %v271_v35 = vor.u32 %v270_v29, %v266_v18  ;;  %v330_v36 = vrot.slane %v328_v30, 1  ;;  %v316_v37 = vshll.u32 %v1360_v2, 16  ;;  %v1430_v61 = vld [vmem:[%s1347_s28 + $0x6c] sm:$0xff]  }
  0x21   : > { %412 = vrot.lane.b32.xlu1 %v1385_v23, %s1265_s30  ;;  %v321_v38 = vshll.u32 %v1150_v3, 16  ;;  %v288_v40 = vsel %vm264_vm1, %v283_v31, %v287_v28  ;;  %v335_v41 = vrot.slane %v333_v33, 1  ;;  %v340_v50 = vshll.u32 %v1397_v39, 16  ;;  %v1164_v3 = vld [vmem:[%s1347_s28 + $0x68] ss:$0 sps:$4 sm:$0x11]  }
  0x22   : > { %404 = vrot.lane.b32.xlu0 %v1389_v27, %s1265_s30  ;;  %v276_v42 = vsel %vm264_vm1, %v271_v35, %v275_v32  ;;  %v331_v43 = vor.u32 %v330_v36, %v326_v26  ;;  %v318_v44 = vrot.slane %v316_v37, 1  ;;  %v292_v53 = vshll.u32 %v1404_v46, 16  ;;  %v1166_v15 = vld [vmem:[%s1347_s28 + $0x74] ss:$0 sps:$4 sm:$0x11]  }
  0x23   : > { %v323_v45 = vrot.slane %v321_v38, 1  ;;  %v338_v54 = vshrl.u32 %v1397_v39, 16  ;;  %v342_v55 = vrot.slane %v340_v50, 1  ;;  %v345_v56 = vshll.u32 %v1157_v47, 16  ;;  %v1475_v38 = vld [vmem:[%s1347_s28 + $0x54] sm:$0xff]  }
  0x24   : > { %v1409_v48 = vsel %vm264_vm1, %v331_v43, %v335_v41  ;;  %v319_v49 = vor.u32 %v318_v44, %v314_v34  ;;  %v297_v58 = vshll.u32 %v1158_v51, 16  ;;  %v290_v59 = vshrl.u32 %v1404_v46, 16  ;;  %v1481_v41 = vld [vmem:[%s1347_s28 + $0x24] sm:$0xff]   ;;  %v1162_v44 = vld [vmem:[%s1347_s28 + $0x2c] ss:$0 sps:$4 sm:$0x11]  }
  0x25   : > { %363 = vrot.lane.b32.xlu1 %v288_v40, %s1266_s4  ;;  %v294_v60 = vrot.slane %v292_v53, 1  ;;  %v343_v62 = vor.u32 %v342_v55, %v338_v54  ;;  %v347_v63 = vrot.slane %v345_v56, 1  ;;  %v443_v5 = vshrl.u32 %v1422_v57, 16  ;;  %v1168_v56 = vld [vmem:[%s1756_s1 + $0x8] sm:$0xff]  }
  0x26   : > { %361 = vrot.lane.b32.xlu0 %v276_v42, %s1266_s4  ;;  %v1415_v52 = vsel %vm264_vm1, %v319_v49, %v323_v45  ;;  %v445_v6 = vshll.u32 %v1422_v57, 16  ;;  %v299_v7 = vrot.slane %v297_v58, 1  ;;  %v470_v8 = vrot.slane %v1422_v57, 1  ;;  %v1161_v42 = vld [vmem:[%s1347_s28 + $0x5c] ss:$0 sps:$4 sm:$0x11]  }
  0x27   : > { %v295_v9 = vor.u32 %v294_v60, %v290_v59  ;;  %v450_v11 = vshll.u32 %v1164_v3, 16  ;;  %v514_v13 = vshrl.u32 %v1430_v61, 16  ;;  %v471_v14 = vrot.slane %v1164_v3, 1  ;;  %s1017_s28 = sshll.u32 %s161_s27, 7 }
  0x28   : > { %v447_v10 = vrot.slane %v445_v6, 1  ;;  %v516_v16 = vshll.u32 %v1430_v61, 16  ;;  %v541_v17 = vrot.slane %v1430_v61, 1  ;;  %v1445_v18 = vsel %vm264_vm1, %v343_v62, %v347_v63  ;;  %v1169_v63 = vld [vmem:[%s1756_s1] sm:$0xff]  }
  0x29   : > { %371 = vrot.lane.b32.xlu1 %v1409_v48, %s1266_s4  ;;  %v452_v20 = vrot.slane %v450_v11, 1  ;;  %v1449_v21 = vsel %vm377_vm0, %v470_v8, %v471_v14  ;;  %v521_v24 = vshll.u32 %v1166_v15, 16  ;;  %v542_v25 = vrot.slane %v1166_v15, 1 }
  0x2a   : > { %369 = vrot.lane.b32.xlu0 %v1415_v52, %s1266_s4  ;;  %v448_v19 = vor.u32 %v447_v10, %v443_v5  ;;  %v518_v22 = vrot.slane %v516_v16, 1  ;;  %v1452_v26 = vsel %vm264_vm1, %v295_v9, %v299_v7  ;;  %v396_v32 = vrot.slane %v1397_v39, 1 }
  0x2b   : > { %v523_v30 = vrot.slane %v521_v24, 1  ;;  %v1460_v31 = vsel %vm377_vm0, %v541_v17, %v542_v25  ;;  %v397_v33 = vrot.slane %v1157_v47, 1  ;;  %v384_v35 = vrot.slane %v1404_v46, 1 }
  0x2c   : > { %v1455_v28 = vsel %vm264_vm1, %v448_v19, %v452_v20  ;;  %v519_v29 = vor.u32 %v518_v22, %v514_v13  ;;  %v385_v36 = vrot.slane %v1158_v51, 1  ;;  %v352_v43 = vshll.u32 %v1475_v38, 16 }
  0x2d   : > { %433 = vrot.lane.b32.xlu1 %v1397_v39, %s1264_s29  ;;  %v1472_v37 = vsel %vm377_vm0, %v396_v32, %v397_v33  ;;  %v304_v45 = vshll.u32 %v1481_v41, 16  ;;  %v350_v47 = vshrl.u32 %v1475_v38, 16  ;;  %v357_v50 = vshll.u32 %v1161_v42, 16 }
  0x2e   : > { %425 = vrot.lane.b32.xlu0 %v1404_v46, %s1264_s29  ;;  %v1466_v34 = vsel %vm264_vm1, %v519_v29, %v523_v30  ;;  %v354_v49 = vrot.slane %v352_v43, 1  ;;  %v302_v53 = vshrl.u32 %v1481_v41, 16  ;;  %v309_v55 = vshll.u32 %v1162_v44, 16 }
  0x2f   : > { %v306_v54 = vrot.slane %v304_v45, 1  ;;  %v359_v59 = vrot.slane %v357_v50, 1  ;;  %v399_v6 = vrot.slane %v1475_v38, 1  ;;  %v400_v7 = vrot.slane %v1161_v42, 1 }
  0x30   : > { %v355_v58 = vor.u32 %v354_v49, %v350_v47  ;;  %v311_v62 = vrot.slane %v309_v55, 1  ;;  %v387_v8 = vrot.slane %v1481_v41, 1  ;;  %v388_v9 = vrot.slane %v1162_v44, 1 }
  0x31   : > { %462 = vrot.lane.b32.xlu1 %v1409_v48, %s1267_s5  ;;  %v307_v60 = vor.u32 %v306_v54, %v302_v53  ;;  %v401_v10 = vsel %vm377_vm0, %v399_v6, %v400_v7 }
  0x32   : > { %454 = vrot.lane.b32.xlu0 %v288_v40, %s1267_s5  ;;  %v386_v40 = vsel %vm377_vm0, %v384_v35, %v385_v36  ;;  %v360_v3 = vsel %vm264_vm1, %v355_v58, %v359_v59  ;;  %v389_v11 = vsel %vm377_vm0, %v387_v8, %v388_v9 }
  0x33   : > { %v312_v5 = vsel %vm264_vm1, %v307_v60, %v311_v62 }
  0x35   : > { %464 = vrot.lane.b32.xlu1 %v1445_v18, %s1267_s5 }
  0x36   : > { %456 = vrot.lane.b32.xlu0 %v1452_v26, %s1267_s5 }
  0x39   : > { %481 = vrot.lane.b32.xlu1 %v1385_v23, %s1268_s6 }
  0x3a   : > { %473 = vrot.lane.b32.xlu0 %v1389_v27, %s1268_s6  ;;  %v1167_v27 = vld [vmem:[%s1756_s1 + $0x10] ss:$0 sps:$4 sm:$0x33]  }
  0x3b   : > { %1096 = vmatprep.subr.msk.bf16.mxu0 %vm740_vm2, %v1167_v27  ;;  %v742_v51 = vsel %vm740_vm2, %v1167_v27, 0  ;;  %1097 = vmatprep.subr.msk.bf16.mxu1 %vm740_vm2, %v1167_v27 }
  0x3c   : > { %1069 = vmatpush3.bf16.msra.mxu0 %v742_v51  ;;  %1093 = vmatpush3.bf16.msra.mxu1 %v742_v51 }
  0x3d   : > { %483 = vrot.lane.b32.xlu1 %v1472_v37, %s1268_s6  ;;  %1070 = vmatprep.subr.bf16.mxu0 %v1168_v56 }
  0x3e   : > { %475 = vrot.lane.b32.xlu0 %v386_v40, %s1268_s6  ;;  %1091 = vmatprep.subr.bf16.mxu1 %v1168_v56 }
  0x40   : > { %1071 = vmatpush3.bf16.msra.mxu0 %v1168_v56  ;;  %1094 = vmatpush3.bf16.msra.mxu1 %v1168_v56 }
  0x41   : > { %502 = vrot.lane.b32.xlu1 %v1397_v39, %s1269_s7  ;;  %1072 = vmatprep.subr.bf16.mxu0 %v1169_v63 }
  0x42   : > { %494 = vrot.lane.b32.xlu0 %v1404_v46, %s1269_s7  ;;  %1092 = vmatprep.subr.bf16.mxu1 %v1169_v63 }
  0x44   : > { %1073 = vmatpush3.bf16.msra.mxu0 %v1169_v63  ;;  %1095 = vmatpush3.bf16.msra.mxu1 %v1169_v63 }
  0x45   : > { %504 = vrot.lane.b32.xlu1 %v1475_v38, %s1269_s7 }
  0x46   : > { %496 = vrot.lane.b32.xlu0 %v1481_v41, %s1269_s7 }
  0x49   : > { %533 = vrot.lane.b32.xlu1 %v1445_v18, %s1270_s17 }
  0x4a   : > { %525 = vrot.lane.b32.xlu0 %v1452_v26, %s1270_s17 }
  0x4d   : > { %535 = vrot.lane.b32.xlu1 %v360_v3, %s1270_s17 }
  0x4e   : > { %527 = vrot.lane.b32.xlu0 %v312_v5, %s1270_s17 }
  0x51   : > { %552 = vrot.lane.b32.xlu1 %v1472_v37, %s1271_s24 }
  0x52   : > { %544 = vrot.lane.b32.xlu0 %v386_v40, %s1271_s24 }
  0x55   : > { %373 = vrot.lane.b32.xlu1 %v1445_v18, %s1266_s4 }
  0x56   : > { %365 = vrot.lane.b32.xlu0 %v1452_v26, %s1266_s4 }
  0x59   : > { %554 = vrot.lane.b32.xlu1 %v401_v10, %s1271_s24 }
  0x5a   : > { %546 = vrot.lane.b32.xlu0 %v389_v11, %s1271_s24 }
  0x5d   : > { %375 = vrot.lane.b32.xlu1 %v360_v3, %s1266_s4 }
  0x5e   : > { %367 = vrot.lane.b32.xlu0 %v312_v5, %s1266_s4  ;;  %s1056_s4 = sshll.u32 %s1315_s16, 11 }
  0x5f   : > { %s1705_s16 = scalar_lea.hbm %s1758_s3, %s1056_s4 }
  0x61   : > { %414 = vrot.lane.b32.xlu1 %v1472_v37, %s1265_s30 }
  0x62   : > { %406 = vrot.lane.b32.xlu0 %v386_v40, %s1265_s30 }
  0x65   : > { %416 = vrot.lane.b32.xlu1 %v401_v10, %s1265_s30 }
  0x66   : > { %408 = vrot.lane.b32.xlu0 %v389_v11, %s1265_s30 }
  0x69   : > { %435 = vrot.lane.b32.xlu1 %v1475_v38, %s1264_s29 }
  0x6a   : > { %427 = vrot.lane.b32.xlu0 %v1481_v41, %s1264_s29 }
  0x6d   : > { %437 = vrot.lane.b32.xlu1 %v1422_v57, %s1264_s29 }
  0x6e   : > { %429 = vrot.lane.b32.xlu0 %v1360_v2, %s1264_s29  ;;  %s1677_s29 = scalar_lea.vmem [#allocation2], %s1017_s28 }
  0x71   : > { %466 = vrot.lane.b32.xlu1 %v360_v3, %s1267_s5 }
  0x72   : > { %458 = vrot.lane.b32.xlu0 %v312_v5, %s1267_s5 }
  0x75   : > { %468 = vrot.lane.b32.xlu1 %v1455_v28, %s1267_s5 }
  0x76   : > { %460 = vrot.lane.b32.xlu0 %v1415_v52, %s1267_s5  ;;  %s951_s5 = sshll.u32 %s1677_s29, 4  ;;  %s1708_s5 = int_to_ptr.vmem [resolvable:$true] %s951_s5 }
  0x77   : > { %s1202_s9 = scalar_lea.vmem %s1708_s5, 2048  ;;  %p1209_p0 = scmp.lt.s32.totalorder %s1708_s5, %s1207_s11 }
  0x78   : > { %p1203_p11 = scmp.ne.s32.totalorder %s1708_s5, %s1202_s9 }
  0x79   : > { %485 = vrot.lane.b32.xlu1 %v401_v10, %s1268_s6 }
  0x7a   : > { %477 = vrot.lane.b32.xlu0 %v389_v11, %s1268_s6  ;;  %p1204_p12 = pnand %p1203_p11, %p1332_p5 }
  0x7c   : > { %p1205_p13 = pneg %p1204_p12 }
  0x7d   : > { %487 = vrot.lane.b32.xlu1 %v1449_v21, %s1268_s6 }
  0x7e   : > { %479 = vrot.lane.b32.xlu0 %v1373_v12, %s1268_s6 }
  0x81   : > { %506 = vrot.lane.b32.xlu1 %v1422_v57, %s1269_s7 }
  0x82   : > { %498 = vrot.lane.b32.xlu0 %v1360_v2, %s1269_s7 }
  0x85   : > { %508 = vrot.lane.b32.xlu1 %v1430_v61, %s1269_s7 }
  0x86   : > { %500 = vrot.lane.b32.xlu0 %v1350_v0, %s1269_s7 }
  0x89   : > { %537 = vrot.lane.b32.xlu1 %v1455_v28, %s1270_s17 }
  0x8a   : > { %529 = vrot.lane.b32.xlu0 %v1415_v52, %s1270_s17 }
  0x8b   : > { %v432_v13 = vpop.permute.xlu1 %431  ;;  %v424_v14 = vpop.permute.xlu0 %423 }
  0x8d   : > { %539 = vrot.lane.b32.xlu1 %v1466_v34, %s1270_s17 }
  0x8e   : > { %531 = vrot.lane.b32.xlu0 %v1409_v48, %s1270_s17  ;;  %s1208_s17 = scalar_lea.vmem %s1207_s11, 4096 }
  0x8f   : > { %v411_v57 = vpop.permute.xlu1 %410  ;;  %p1210_p1 = scmp.lt.s32.totalorder %s1208_s17, %s1202_s9 }
  0x90   : > { %v403_v15 = vpop.permute.xlu0 %402 }
  0x91   : > { %556 = vrot.lane.b32.xlu1 %v1449_v21, %s1271_s24  ;;  %p1211_p2 = por %p1210_p1, %p1209_p0 }
  0x92   : > { %548 = vrot.lane.b32.xlu0 %v1373_v12, %s1271_s24 }
  0x93   : > { %v413_v61 = vpop.permute.xlu1 %412  ;;  %p1212_p3 = pnand %p1211_p2, %p1205_p13 }
  0x94   : > { %v405_v16 = vpop.permute.xlu0 %404 }
  0x95   : > { %558 = vrot.lane.b32.xlu1 %v1460_v31, %s1271_s24 }
  0x96   : > { %550 = vrot.lane.b32.xlu0 %v1385_v23, %s1271_s24 }
  0x97   : > { %v364_v52 = vpop.permute.xlu1 %363 }
  0x98   : > { %v362_v17 = vpop.permute.xlu0 %361  ;;  %v564_v56 = vsel %vm560_vm3, %v1353_v1, %v364_v52 }
  0x99   : > { %v562_v34 = vsel %vm560_vm3, %v1364_v4, %v362_v17  ;;  %v581_v3 = vsel %vm577_vm4, %v564_v56, %v405_v16 }
  0x9a   : > { %v579_v40 = vsel %vm577_vm4, %v562_v34, %v403_v15 }
  0x9b   : > { %v372_v18 = vpop.permute.xlu1 %371  ;;  %v596_v44 = vsel %vm594_vm6, %v579_v40, %v424_v14 }
  0x9c   : > { %v370_v48 = vpop.permute.xlu0 %369  ;;  %v572_v49 = vsel %vm560_vm3, %v1350_v0, %v372_v18 }
  0x9d   : > { %v570_v23 = vsel %vm560_vm3, %v1360_v2, %v370_v48  ;;  %v589_v60 = vsel %vm577_vm4, %v572_v49, %v413_v61 }
  0x9e   : > { %v587_v36 = vsel %vm577_vm4, %v570_v23, %v411_v57 }
  0x9f   : > { %v434_v19 = vpop.permute.xlu1 %433  ;;  %v604_v42 = vsel %vm594_vm6, %v587_v36, %v432_v13 }
  0xa0   : > { %v426_v20 = vpop.permute.xlu0 %425  ;;  %v606_v62 = vsel %vm594_vm6, %v589_v60, %v434_v19 }
  0xa1   : > { %v598_v1 = vsel %vm594_vm6, %v581_v3, %v426_v20 }
  0xa3   : > { %v463_v22 = vpop.permute.xlu1 %462 }
  0xa4   : > { %v455_v24 = vpop.permute.xlu0 %454  ;;  %v621_v2 = vsel %vm611_vm5, %v604_v42, %v463_v22 }
  0xa5   : > { %v613_v27 = vsel %vm611_vm5, %v596_v44, %v455_v24 }
  0xa7   : > { %v465_v21 = vpop.permute.xlu1 %464 }
  0xa8   : > { %v457_v25 = vpop.permute.xlu0 %456  ;;  %v623_v5 = vsel %vm611_vm5, %v606_v62, %v465_v21 }
  0xa9   : > { %v615_v8 = vsel %vm611_vm5, %v598_v1, %v457_v25 }
  0xab   : > { %v482_v26 = vpop.permute.xlu1 %481 }
  0xac   : > { %v474_v12 = vpop.permute.xlu0 %473  ;;  %v638_v4 = vsel %vm628_vm7, %v621_v2, %v482_v26 }
  0xad   : > { %v630_v50 = vsel %vm628_vm7, %v613_v27, %v474_v12 }
  0xaf   : > { %v484_v28 = vpop.permute.xlu1 %483 }
  0xb0   : > { %v476_v29 = vpop.permute.xlu0 %475  ;;  %v640_v6 = vsel %vm628_vm7, %v623_v5, %v484_v28 }
  0xb1   : > { %v632_v10 = vsel %vm628_vm7, %v615_v8, %v476_v29 }
  0xb3   : > { %v503_v30 = vpop.permute.xlu1 %502 }
  0xb4   : > { %v495_v32 = vpop.permute.xlu0 %494  ;;  %v655_v47 = vsel %vm645_vm8, %v638_v4, %v503_v30 }
  0xb5   : > { %v647_v54 = vsel %vm645_vm8, %v630_v50, %v495_v32 }
  0xb7   : > { %v505_v31 = vpop.permute.xlu1 %504 }
  0xb8   : > { %v497_v33 = vpop.permute.xlu0 %496  ;;  %v657_v9 = vsel %vm645_vm8, %v640_v6, %v505_v31 }
  0xb9   : > { %v649_v14 = vsel %vm645_vm8, %v632_v10, %v497_v33 }
  0xbb   : > { %v534_v35 = vpop.permute.xlu1 %533 }
  0xbc   : > { %v526_v37 = vpop.permute.xlu0 %525  ;;  %v672_v51 = vsel %vm662_vm9, %v655_v47, %v534_v35 }
  0xbd   : > { %v664_v58 = vsel %vm662_vm9, %v647_v54, %v526_v37 }
  0xbf   : > { %v536_v43 = vpop.permute.xlu1 %535 }
  0xc0   : > { %v528_v45 = vpop.permute.xlu0 %527  ;;  %v674_v11 = vsel %vm662_vm9, %v657_v9, %v536_v43 }
  0xc1   : > { %v666_v15 = vsel %vm662_vm9, %v649_v14, %v528_v45 }
  0xc3   : > { %v553_v53 = vpop.permute.xlu1 %552 }
  0xc4   : > { %v689_v55 = vsel %vm679_vm10, %v672_v51, %v553_v53  ;;  %v545_v59 = vpop.permute.xlu0 %544 }
  0xc5   : > { %1082 = vmatprep.mubr.msk.bf16.mxu1 %vm723_vm11, %v689_v55  ;;  %v681_v0 = vsel %vm679_vm10, %v664_v58, %v545_v59 }
  0xc6   : > { %1074 = vmatprep.mubr.msk.bf16.mxu0 %vm723_vm11, %v681_v0 }
  0xc7   : > { %v374_v63 = vpop.permute.xlu1 %373 }
  0xc8   : > { %v366_v7 = vpop.permute.xlu0 %365  ;;  %v574_v40 = vsel %vm560_vm3, %v1397_v39, %v374_v63 }
  0xc9   : > { %v566_v2 = vsel %vm560_vm3, %v1404_v46, %v366_v7 }
  0xcb   : > { %v555_v13 = vpop.permute.xlu1 %554 }
  0xcc   : > { %v691_v57 = vsel %vm679_vm10, %v674_v11, %v555_v13  ;;  %v547_v61 = vpop.permute.xlu0 %546 }
  0xcd   : > { %1083 = vmatmul.mubr.msk.bf16.vlgmr.msra.gmra.mxu1 %vm723_vm11, %v691_v57  ;;  %v683_v16 = vsel %vm679_vm10, %v666_v15, %v547_v61  ;;  %v1664_v61 = vld [vmem:[%s1757_s2] ss:$0 sm:$0xff] }
  0xce   : > { %1075 = vmatmul.mubr.msk.bf16.vlgmr.msra.gmra.mxu0 %vm723_vm11, %v683_v16 }
  0xcf   : > { %v376_v52 = vpop.permute.xlu1 %375 }
  0xd0   : > { %v368_v17 = vpop.permute.xlu0 %367  ;;  %v576_v47 = vsel %vm560_vm3, %v1475_v38, %v376_v52 }
  0xd1   : > { %v568_v54 = vsel %vm560_vm3, %v1481_v41, %v368_v17 }
  0xd3   : > { %v415_v18 = vpop.permute.xlu1 %414 }
  0xd4   : > { %v407_v48 = vpop.permute.xlu0 %406  ;;  %v591_v43 = vsel %vm577_vm4, %v574_v40, %v415_v18 }
  0xd5   : > { %v583_v45 = vsel %vm577_vm4, %v566_v2, %v407_v48 }
  0xd7   : > { %v417_v19 = vpop.permute.xlu1 %416 }
  0xd8   : > { %v409_v20 = vpop.permute.xlu0 %408  ;;  %v593_v51 = vsel %vm577_vm4, %v576_v47, %v417_v19 }
  0xd9   : > { %v585_v59 = vsel %vm577_vm4, %v568_v54, %v409_v20 }
  0xdb   : > { %v436_v22 = vpop.permute.xlu1 %435 }
  0xdc   : > { %v428_v24 = vpop.permute.xlu0 %427  ;;  %v608_v44 = vsel %vm594_vm6, %v591_v43, %v436_v22 }
  0xdd   : > { %v600_v49 = vsel %vm594_vm6, %v583_v45, %v428_v24 }
  0xdf   : > { %v438_v21 = vpop.permute.xlu1 %437 }
  0xe0   : > { %v430_v25 = vpop.permute.xlu0 %429  ;;  %v610_v55 = vsel %vm594_vm6, %v593_v51, %v438_v21 }
  0xe1   : > { %v602_v63 = vsel %vm594_vm6, %v585_v59, %v430_v25 }
  0xe3   : > { %v467_v26 = vpop.permute.xlu1 %466 }
  0xe4   : > { %v459_v12 = vpop.permute.xlu0 %458  ;;  %v625_v27 = vsel %vm611_vm5, %v608_v44, %v467_v26 }
  0xe5   : > { %v617_v53 = vsel %vm611_vm5, %v600_v49, %v459_v12 }
  0xe7   : > { %v469_v28 = vpop.permute.xlu1 %468 }
  0xe8   : > { %v461_v29 = vpop.permute.xlu0 %460  ;;  %v627_v60 = vsel %vm611_vm5, %v610_v55, %v469_v28 }
  0xe9   : > { %v619_v1 = vsel %vm611_vm5, %v602_v63, %v461_v29 }
  0xeb   : > { %v486_v30 = vpop.permute.xlu1 %485 }
  0xec   : > { %v478_v32 = vpop.permute.xlu0 %477  ;;  %v642_v39 = vsel %vm628_vm7, %v625_v27, %v486_v30 }
  0xed   : > { %v634_v56 = vsel %vm628_vm7, %v617_v53, %v478_v32 }
  0xef   : > { %v488_v31 = vpop.permute.xlu1 %487 }
  0xf0   : > { %v480_v23 = vpop.permute.xlu0 %479  ;;  %v644_v3 = vsel %vm628_vm7, %v627_v60, %v488_v31 }
  0xf1   : > { %v636_v8 = vsel %vm628_vm7, %v619_v1, %v480_v23 }
  0xf3   : > { %v507_v33 = vpop.permute.xlu1 %506 }
  0xf4   : > { %v499_v34 = vpop.permute.xlu0 %498  ;;  %v659_v46 = vsel %vm645_vm8, %v642_v39, %v507_v33 }
  0xf5   : > { %v651_v0 = vsel %vm645_vm8, %v634_v56, %v499_v34 }
  0xf7   : > { %v509_v35 = vpop.permute.xlu1 %508 }
  0xf8   : > { %v501_v36 = vpop.permute.xlu0 %500  ;;  %v661_v6 = vsel %vm645_vm8, %v644_v3, %v509_v35 }
  0xf9   : > { %v653_v11 = vsel %vm645_vm8, %v636_v8, %v501_v36 }
  0xfb   : > { %v538_v37 = vpop.permute.xlu1 %537 }
  0xfc   : > { %v530_v42 = vpop.permute.xlu0 %529  ;;  %v676_v38 = vsel %vm662_vm9, %v659_v46, %v538_v37 }
  0xfd   : > { %v668_v41 = vsel %vm662_vm9, %v651_v0, %v530_v42 }
  0xff   : > { %v540_v4 = vpop.permute.xlu1 %539 }
 0x100   : > { %v532_v50 = vpop.permute.xlu0 %531  ;;  %v678_v9 = vsel %vm662_vm9, %v661_v6, %v540_v4 }
 0x101   : > { %v670_v14 = vsel %vm662_vm9, %v653_v11, %v532_v50 }
 0x103   : > { %v557_v58 = vpop.permute.xlu1 %556 }
 0x104   : > { %v693_v62 = vsel %vm679_vm10, %v676_v38, %v557_v58  ;;  %v549_v5 = vpop.permute.xlu0 %548 }
 0x105   : > { %1086 = vmatprep.mubr.msk.bf16.mxu1 %vm723_vm11, %v693_v62  ;;  %v685_v7 = vsel %vm679_vm10, %v668_v41, %v549_v5 }
 0x106   : > { %1078 = vmatprep.mubr.msk.bf16.mxu0 %vm723_vm11, %v685_v7 }
 0x107   : > { %v559_v10 = vpop.permute.xlu1 %558 }
 0x108   : > { %v695_v13 = vsel %vm679_vm10, %v678_v9, %v559_v10  ;;  %v551_v57 = vpop.permute.xlu0 %550 }
 0x109   : > { %1087 = vmatmul.mubr.msk.bf16.gmra.mxu1 %vm723_vm11, %v695_v13  ;;  %v687_v15 = vsel %vm679_vm10, %v670_v14, %v551_v57 }
 0x10a   : > { %1079 = vmatmul.mubr.msk.bf16.gmra.mxu0 %vm723_vm11, %v687_v15 }
 0x18d   : > { %v1084_v16 = vpop.f32.mrf.mxu1 }
 0x18e   : > { %v819_v52 = vadd.f32 %v1084_v16, %v1664_v61  ;;  %v1076_v17 = vpop.f32.mrf.mxu0 }
 0x18f   : > { %v810_v18 = vpop.f32.mrf.mxu1  ;;  %v787_v48 = vadd.f32 %v1076_v17, %v1664_v61 }
 0x190   : > { %v867_v19 = vmul.f32 0.70710677, %v819_v52  ;;  %v811_v20 = vadd.f32 %v1664_v61, %v810_v18  ;;  %v778_v22 = vpop.f32.mrf.mxu0  ;;  %v851_v42 = vmul.f32 0.5, %v819_v52 }
 0x191   : > { %v1085_v24 = vpop.f32.mrf.mxu1  ;;  %v859_v21 = vmul.f32 0.70710677, %v787_v48  ;;  %v779_v25 = vadd.f32 %v1664_v61, %v778_v22  ;;  %v843_v4 = vmul.f32 0.5, %v787_v48 }
 0x192   : > { %1170 = verf.f32 %v867_v19  ;;  %v865_v26 = vmul.f32 0.70710677, %v811_v20  ;;  %v1077_v12 = vpop.f32.mrf.mxu0  ;;  %v822_v28 = vadd.f32 %v1085_v24, %v1664_v61  ;;  %v849_v49 = vmul.f32 0.5, %v811_v20 }
 0x193   : > { %v813_v29 = vpop.f32.mrf.mxu1  ;;  %1172 = verf.f32 %v859_v21  ;;  %v857_v30 = vmul.f32 0.70710677, %v779_v25  ;;  %v790_v32 = vadd.f32 %v1077_v12, %v1664_v61  ;;  %v841_v53 = vmul.f32 0.5, %v779_v25 }
 0x194   : > { %1174 = verf.f32 %v865_v26  ;;  %v868_v31 = vmul.f32 0.70710677, %v822_v28  ;;  %v781_v23 = vpop.f32.mrf.mxu0  ;;  %v814_v33 = vadd.f32 %v1664_v61, %v813_v29  ;;  %v852_v56 = vmul.f32 0.5, %v822_v28 }
 0x195   : > { %1176 = verf.f32 %v857_v30  ;;  %v860_v34 = vmul.f32 0.70710677, %v790_v32  ;;  %v782_v35 = vadd.f32 %v1664_v61, %v781_v23  ;;  %v844_v60 = vmul.f32 0.5, %v790_v32 }
 0x196   : > { %1178 = verf.f32 %v868_v31  ;;  %v866_v36 = vmul.f32 0.70710677, %v814_v33  ;;  %v850_v3 = vmul.f32 0.5, %v814_v33 }
 0x197   : > { %1180 = verf.f32 %v860_v34  ;;  %v858_v37 = vmul.f32 0.70710677, %v782_v35  ;;  %v842_v1 = vmul.f32 0.5, %v782_v35 }
 0x198   : > { %1182 = verf.f32 %v866_v36 }
 0x199   : > { %1184 = verf.f32 %v858_v37 }
 0x19f   : > { %v1171_v40 = vpop.eup %1170 }
 0x1a0   : > { %v899_v43 = vadd.f32 1.0, %v1171_v40  ;;  %v1173_v2 = vpop.eup %1172 }
 0x1a1   : > { %v1175_v44 = vpop.eup %1174  ;;  %v891_v45 = vadd.f32 1.0, %v1173_v2 }
 0x1a2   : > { %v915_v27 = vmul.f32 %v899_v43, %v851_v42  ;;  %v1177_v47 = vpop.eup %1176  ;;  %v897_v39 = vadd.f32 1.0, %v1175_v44 }
 0x1a3   : > { %v1179_v50 = vpop.eup %1178  ;;  %v907_v51 = vmul.f32 %v891_v45, %v843_v4  ;;  %v889_v46 = vadd.f32 1.0, %v1177_v47 }
 0x1a4   : > { %931 = vst [vmem:[%s1677_s29 + $0x50] sm:$0xff] %v915_v27  ;;  %v1181_v54 = vpop.eup %1180  ;;  %v913_v55 = vmul.f32 %v897_v39, %v849_v49  ;;  %v900_v38 = vadd.f32 1.0, %v1179_v50 }
 0x1a5   : > { %v1183_v58 = vpop.eup %1182  ;;  %923 = vst [vmem:[%s1677_s29 + $0x10] sm:$0xff] %v907_v51  ;;  %v905_v59 = vmul.f32 %v889_v46, %v841_v53  ;;  %v892_v0 = vadd.f32 1.0, %v1181_v54 }
 0x1a6   : > { %v1185_v62 = vpop.eup %1184  ;;  %929 = vst [vmem:[%s1677_s29 + $0x40] sm:$0xff] %v913_v55  ;;  %v916_v63 = vmul.f32 %v900_v38, %v852_v56  ;;  %v898_v41 = vadd.f32 1.0, %v1183_v58 }
 0x1a7   : > { %921 = vst [vmem:[%s1677_s29] sm:$0xff] %v905_v59  ;;  %v908_v5 = vmul.f32 %v892_v0, %v844_v60  ;;  %v890_v6 = vadd.f32 1.0, %v1185_v62 }
 0x1a8   : > { %932 = vst [vmem:[%s1677_s29 + $0x58] sm:$0xff] %v916_v63  ;;  %v914_v7 = vmul.f32 %v898_v41, %v850_v3 }
 0x1a9   : > { %924 = vst [vmem:[%s1677_s29 + $0x18] sm:$0xff] %v908_v5  ;;  %v906_v8 = vmul.f32 %v890_v6, %v842_v1 }
 0x1aa   : > { %930 = vst [vmem:[%s1677_s29 + $0x48] sm:$0xff] %v914_v7 }
 0x1ab   : > { %922 = vst [vmem:[%s1677_s29 + $0x8] sm:$0xff] %v906_v8 }
 0x1c9   : > { %v1088_v9 = vpop.f32.mrf.mxu1 }
 0x1ca   : > { %v835_v10 = vadd.f32 %v1088_v9, %v1664_v61  ;;  %v1080_v11 = vpop.f32.mrf.mxu0 }
 0x1cb   : > { %v826_v13 = vpop.f32.mrf.mxu1  ;;  %v803_v14 = vadd.f32 %v1080_v11, %v1664_v61 }
 0x1cc   : > { %v871_v57 = vmul.f32 0.70710677, %v835_v10  ;;  %v827_v15 = vadd.f32 %v1664_v61, %v826_v13  ;;  %v794_v16 = vpop.f32.mrf.mxu0  ;;  %v855_v23 = vmul.f32 0.5, %v835_v10 }
 0x1cd   : > { %v1089_v52 = vpop.f32.mrf.mxu1  ;;  %v863_v17 = vmul.f32 0.70710677, %v803_v14  ;;  %v795_v18 = vadd.f32 %v1664_v61, %v794_v16  ;;  %v847_v36 = vmul.f32 0.5, %v803_v14 }
 0x1ce   : > { %1186 = verf.f32 %v871_v57  ;;  %v869_v48 = vmul.f32 0.70710677, %v827_v15  ;;  %v1081_v19 = vpop.f32.mrf.mxu0  ;;  %v838_v20 = vadd.f32 %v1089_v52, %v1664_v61  ;;  %v853_v43 = vmul.f32 0.5, %v827_v15 }
 0x1cf   : > { %v829_v22 = vpop.f32.mrf.mxu1  ;;  %1188 = verf.f32 %v863_v17  ;;  %v861_v24 = vmul.f32 0.70710677, %v795_v18  ;;  %v806_v21 = vadd.f32 %v1081_v19, %v1664_v61  ;;  %v845_v4 = vmul.f32 0.5, %v795_v18 }
 0x1d0   : > { %1190 = verf.f32 %v869_v48  ;;  %v872_v25 = vmul.f32 0.70710677, %v838_v20  ;;  %v797_v26 = vpop.f32.mrf.mxu0  ;;  %v830_v12 = vadd.f32 %v1664_v61, %v829_v22  ;;  %v856_v49 = vmul.f32 0.5, %v838_v20 }
 0x1d1   : > { %1192 = verf.f32 %v861_v24  ;;  %v864_v28 = vmul.f32 0.70710677, %v806_v21  ;;  %v798_v29 = vadd.f32 %v1664_v61, %v797_v26  ;;  %v848_v53 = vmul.f32 0.5, %v806_v21 }
 0x1d2   : > { %1194 = verf.f32 %v872_v25  ;;  %v870_v30 = vmul.f32 0.70710677, %v830_v12  ;;  %v854_v56 = vmul.f32 0.5, %v830_v12 }
 0x1d3   : > { %1196 = verf.f32 %v864_v28  ;;  %v862_v32 = vmul.f32 0.70710677, %v798_v29  ;;  %v846_v59 = vmul.f32 0.5, %v798_v29 }
 0x1d4   : > { %1198 = verf.f32 %v870_v30 }
 0x1d5   : > { %1200 = verf.f32 %v862_v32 }
 0x1db   : > { %v1187_v31 = vpop.eup %1186 }
 0x1dc   : > { %v903_v33 = vadd.f32 1.0, %v1187_v31  ;;  %v1189_v34 = vpop.eup %1188 }
 0x1dd   : > { %v1191_v35 = vpop.eup %1190  ;;  %v895_v37 = vadd.f32 1.0, %v1189_v34 }
 0x1de   : > { %v919_v40 = vmul.f32 %v903_v33, %v855_v23  ;;  %v1193_v42 = vpop.eup %1192  ;;  %v901_v61 = vadd.f32 1.0, %v1191_v35 }
 0x1df   : > { %v1195_v2 = vpop.eup %1194  ;;  %v911_v44 = vmul.f32 %v895_v37, %v847_v36  ;;  %v893_v45 = vadd.f32 1.0, %v1193_v42 }
 0x1e0   : > { %935 = vst [vmem:[%s1677_s29 + $0x70] sm:$0xff] %v919_v40  ;;  %v1197_v27 = vpop.eup %1196  ;;  %v917_v47 = vmul.f32 %v901_v61, %v853_v43  ;;  %v904_v39 = vadd.f32 1.0, %v1195_v2 }
 0x1e1   : > { %v1199_v50 = vpop.eup %1198  ;;  %927 = vst [vmem:[%s1677_s29 + $0x30] sm:$0xff] %v911_v44  ;;  %v909_v51 = vmul.f32 %v893_v45, %v845_v4  ;;  %v896_v46 = vadd.f32 1.0, %v1197_v27 }
 0x1e2   : > { %v1201_v54 = vpop.eup %1200  ;;  %933 = vst [vmem:[%s1677_s29 + $0x60] sm:$0xff] %v917_v47  ;;  %v920_v55 = vmul.f32 %v904_v39, %v856_v49  ;;  %v902_v38 = vadd.f32 1.0, %v1199_v50 }
 0x1e3   : > { %925 = vst [vmem:[%s1677_s29 + $0x20] sm:$0xff] %v909_v51  ;;  %v912_v58 = vmul.f32 %v896_v46, %v848_v53  ;;  %v894_v60 = vadd.f32 1.0, %v1201_v54 }
 0x1e4   : > { %936 = vst [vmem:[%s1677_s29 + $0x78] sm:$0xff] %v920_v55  ;;  %v918_v0 = vmul.f32 %v902_v38, %v854_v56 }
 0x1e5   : > { %928 = vst [vmem:[%s1677_s29 + $0x38] sm:$0xff] %v912_v58  ;;  %v910_v62 = vmul.f32 %v894_v60, %v846_v59 }
 0x1e6   : > { %934 = vst [vmem:[%s1677_s29 + $0x68] sm:$0xff] %v918_v0 }
 0x1e7   : > { %926 = vst [vmem:[%s1677_s29 + $0x28] sm:$0xff] %v910_v62 }
 0x1e8   : > { %1215 = shalt.err (!%p1212_p3)
}
 0x1e9   : > { %s1216_s19 = scalar_lea.hbm %s1705_s16, 2048  ;;  %s1220_s25 = scalar_lea.hbm %s1758_s3, 8192 }
 0x1ea   : > { %p1217_p4 = scmp.ne.s32.totalorder %s1705_s16, %s1216_s19  ;;  %p1221_p9 = scmp.lt.s32.totalorder %s1705_s16, %s1758_s3 }
 0x1eb   : > { %p1222_p10 = scmp.lt.s32.totalorder %s1220_s25, %s1216_s19 }
 0x1ec   : > { %p1218_p7 = pnand %p1217_p4, %p1332_p5 }
 0x1ed   : > { %p1223_p11 = por %p1222_p10, %p1221_p9 }
 0x1ee   : > { %p1219_p8 = pneg %p1218_p7 }
 0x1f0   : > { %p1224_p12 = pnand %p1223_p11, %p1219_p8 }
 0x1f2   : > { %1227 = shalt.err (!%p1224_p12)
}
 0x1f3   : > { %s1273_s28 = smov 128  }
 0x1f4   : > { %1099 = dma.vmem_to_hbm [thread:$0]  (%p1332_p5), %s1708_s5, 2048, %s1705_s16, %s1714_s8, %s1273_s28, %s1273_s28, %s1265_s30  }
 0x1f5 PF: > { %p1105_p13 = scmp.ge.s32.totalorder %s1262_s15, 2  ;;  %s966_s29 = sand.u32 1, %s1250_s12  }
 0x1f6   : > { %s967_s4 = scalar_lea.sflag [#allocation3], %s966_s29 }
 0x1f7   : > { %p1102_p0 = pnand %p1105_p13, %p1336_p6 }
 0x1f9   : > { %p1103_p1 = pneg %p1102_p0 }
 0x1fb   : > { %1245 = dma.done.wait (%p1103_p1), %s967_s4, 2048  }
 0x1fc   : > { %1247 = vsyncadd (%p1103_p1), %s967_s4, 4294965248  ;;  %p13_p2 = scmp.ge.s32.totalorder %s1319_s18, 6   ;;  %s1761_s12 = smov %s1254_s13 }
 0x1fd   : > { %s1762_s13 = smov %s1258_s14  ;;  %s1763_s14 = smov %s1330_s21 }
 0x1fe   : > { %s1764_s15 = smov %s1319_s18  ;;  %15 = sbr.rel (!%p13_p2) target bundleno = 3 (0x3), region = 67 }
 0x203   :  { %972 = vsyncpa [#allocation3], 1 }
 0x204   :  { %974 = vsyncpa [#allocation3 + $0x1], 1 }

</bundles_post_ra>
